<compile_context>
chip_gen: v6e
topology: v6e:2x2x1
jax: 0.10.0
libtpu: 0.0.40
codegen_flags: <defaults>
</compile_context>

<pallas_src>
import functools

import jax
import jax.numpy as jnp
from jax.experimental import pallas as pl
from jax.experimental.pallas import tpu as pltpu

EXPERT_HIDDEN = (64, 32)


def _round_up(x, m):
    return (x + m - 1) // m * m


def expert_gate_kernel(x_ref, w1g_ref, b1g_ref, w2_ref, b2_ref, w3_ref, b3_ref,
                       out_ref, *, n_expert, n_task, expert_dim, out_width):
    h1, h2 = EXPERT_HIDDEN
    w1_cols = n_expert * h1

    x = x_ref[...].astype(jnp.bfloat16)                       # [TB, F]

    # --- Fused layer-1 (all experts) + all gate logits: one wide MXU matmul ---
    y = jnp.dot(x, w1g_ref[...], preferred_element_type=jnp.float32) + b1g_ref[...]
    h = jnp.maximum(y[:, :w1_cols], 0.0)                      # [TB, n_expert*64]
    logits = y[:, w1_cols:]                                   # [TB, n_task*n_expert]

    # --- Block-diagonal fused layer-2 / layer-3 (all experts at once) ---
    h = jnp.dot(h.astype(jnp.bfloat16), w2_ref[...],
                preferred_element_type=jnp.float32) + b2_ref[...]
    h = jnp.maximum(h, 0.0)                                   # [TB, n_expert*32]
    h = jnp.dot(h.astype(jnp.bfloat16), w3_ref[...],
                preferred_element_type=jnp.float32) + b3_ref[...]
    h = jnp.maximum(h, 0.0)                                   # [TB, n_expert*E]

    # --- Per-task softmax gate over experts + on-the-fly weighted combine ---
    towers = []
    for t in range(n_task):
        lg = logits[:, t * n_expert:(t + 1) * n_expert]       # [TB, n_expert]
        m = jnp.max(lg, axis=-1, keepdims=True)
        p = jnp.exp(lg - m)
        g = p * pl.reciprocal(jnp.sum(p, axis=-1, keepdims=True), approx=True)
        acc = g[:, 0:1] * h[:, 0:expert_dim]
        for e in range(1, n_expert):
            acc = acc + g[:, e:e + 1] * h[:, e * expert_dim:(e + 1) * expert_dim]
        towers.append(acc)

    result = jnp.concatenate(towers, axis=1)                  # [TB, n_task*E]
    pad = out_width - n_task * expert_dim
    if pad:
        result = jnp.concatenate(
            [result, jnp.zeros((result.shape[0], pad), jnp.float32)], axis=1)
    out_ref[...] = result                                     # lane-dense store


def pack_params(params, *, n_expert, n_task):
    """Fuse weights/biases into wide / block-diagonal matrices (bf16 for MXU)."""
    w1, b1, w2, b2, w3, b3, gw, gb = params
    w1f = jnp.concatenate(list(w1), axis=1)                   # [F, n_expert*64]
    gwf = jnp.concatenate(list(gw), axis=1)                   # [F, n_task*n_expert]
    w1g = jnp.concatenate([w1f, gwf], axis=1).astype(jnp.bfloat16)
    b1g = jnp.concatenate([jnp.concatenate(list(b1), axis=1),
                           jnp.concatenate(list(gb), axis=1)], axis=1)  # f32
    w2bd = jax.scipy.linalg.block_diag(*[w2[e] for e in range(n_expert)]
                                       ).astype(jnp.bfloat16)           # [256,128]
    b2f = jnp.concatenate(list(b2), axis=1)
    w3bd = jax.scipy.linalg.block_diag(*[w3[e] for e in range(n_expert)]
                                       ).astype(jnp.bfloat16)           # [128, n_expert*E]
    b3f = jnp.concatenate(list(b3), axis=1)
    return w1g, b1g, w2bd, b2f, w3bd, b3f


def expert_gate_forward(x, params, *, n_expert, n_task, expert_dim, block_b=512):
    """x: [B, F] float32. Returns list of n_task arrays of shape [B, expert_dim]."""
    B, F = x.shape
    h1, h2 = EXPERT_HIDDEN
    w1g, b1g, w2bd, b2f, w3bd, b3f = pack_params(params, n_expert=n_expert,
                                                 n_task=n_task)

    # Batch tile: largest of 512 / padded-B (weights are tiny and resident,
    # so VMEM budget is dominated by double-buffered x/out tiles).
    TB = min(block_b, _round_up(B, 8))
    B_pad = _round_up(B, TB)
    if B_pad != B:
        x = jnp.pad(x, ((0, B_pad - B), (0, 0)))

    out_width = _round_up(n_task * expert_dim, 128)           # lane-dense output
    w1_cols = n_expert * h1
    gate_cols = n_task * n_expert

    kernel = functools.partial(expert_gate_kernel, n_expert=n_expert,
                               n_task=n_task, expert_dim=expert_dim,
                               out_width=out_width)

    def const_spec(a):
        nd = a.ndim
        return pl.BlockSpec(a.shape, lambda i, _nd=nd: (0,) * _nd)

    flops = 2 * B_pad * (F * (w1_cols + gate_cols)
                         + w1_cols * (n_expert * h2)
                         + (n_expert * h2) * (n_expert * expert_dim)
                         + n_task * n_expert * expert_dim)
    bytes_accessed = (B_pad * F * 4
                      + (w1g.size + w2bd.size + w3bd.size) * 2
                      + (b1g.size + b2f.size + b3f.size) * 4
                      + B_pad * out_width * 4)

    out = pl.pallas_call(
        kernel,
        out_shape=jax.ShapeDtypeStruct((B_pad, out_width), jnp.float32),
        grid=(B_pad // TB,),
        in_specs=[
            pl.BlockSpec((TB, F), lambda i: (i, 0)),          # x: batch-tiled
            const_spec(w1g), const_spec(b1g),                 # resident weights
            const_spec(w2bd), const_spec(b2f),
            const_spec(w3bd), const_spec(b3f),
        ],
        out_specs=pl.BlockSpec((TB, out_width), lambda i: (i, 0)),
        compiler_params=pltpu.CompilerParams(
            dimension_semantics=("parallel",),                # 2 TCs on v7x
            vmem_limit_bytes=48 * 1024 * 1024),               # safe on v5e/v6e/v7x
        cost_estimate=pl.CostEstimate(
            flops=flops,
            transcendentals=B_pad * n_task * n_expert,
            bytes_accessed=bytes_accessed),
    )(x, w1g, b1g, w2bd, b2f, w3bd, b3f)

    return [out[:B, t * expert_dim:(t + 1) * expert_dim] for t in range(n_task)]


def init_params(key, feature_dim, expert_dim, n_expert, n_task):
    """Deterministic synthetic init (PyTorch-Linear-style uniform bounds)."""
    h1, h2 = EXPERT_HIDDEN
    ks = jax.random.split(key, 8)

    def u(k, shape, fan_in):
        bound = 1.0 / jnp.sqrt(jnp.float32(fan_in))
        return jax.random.uniform(k, shape, jnp.float32, -bound, bound)

    w1 = u(ks[0], (n_expert, feature_dim, h1), feature_dim)
    b1 = u(ks[1], (n_expert, 1, h1), feature_dim)
    w2 = u(ks[2], (n_expert, h1, h2), h1)
    b2 = u(ks[3], (n_expert, 1, h2), h1)
    w3 = u(ks[4], (n_expert, h2, expert_dim), h2)
    b3 = u(ks[5], (n_expert, 1, expert_dim), h2)
    gw = u(ks[6], (n_task, feature_dim, n_expert), feature_dim)
    gb = u(ks[7], (n_task, 1, n_expert), feature_dim)
    return (w1, b1, w2, b2, w3, b3, gw, gb)


def reference_forward(x, params, *, n_expert, n_task):
    """Plain-JAX f32 reference mirroring the PyTorch forward (use_gate=True)."""
    w1, b1, w2, b2, w3, b3, gw, gb = params
    e_list = []
    for e in range(n_expert):
        h = jnp.maximum(x @ w1[e] + b1[e], 0.0)
        h = jnp.maximum(h @ w2[e] + b2[e], 0.0)
        h = jnp.maximum(h @ w3[e] + b3[e], 0.0)
        e_list.append(h)
    E_net = jnp.stack(e_list, axis=1)                         # [B, n_expert, E]
    towers = []
    for t in range(n_task):
        g = jax.nn.softmax(x @ gw[t] + gb[t], axis=1)         # [B, n_expert]
        towers.append(jnp.einsum("bne,bn->be", E_net, g))     # [B, E]
    return towers


if __name__ == "__main__":
    # Small shapes consistent with the module.
    B, feature_dim, expert_dim = 8, 32, 16
    n_expert, n_task = 4, 2

    key = jax.random.PRNGKey(0)
    kx, kp = jax.random.split(key)
    x = jax.random.normal(kx, (B, feature_dim), jnp.float32)
    params = init_params(kp, feature_dim, expert_dim, n_expert, n_task)

    towers = expert_gate_forward(x, params, n_expert=n_expert, n_task=n_task,
                                 expert_dim=expert_dim)
    towers = [jax.block_until_ready(t) for t in towers]

    ref = reference_forward(x, params, n_expert=n_expert, n_task=n_task)
    for got, want in zip(towers, ref):
        assert got.shape == (B, expert_dim)
        # bf16 matmul inputs + approx reciprocal -> loosened tolerance vs f32 ref.
        assert jnp.allclose(got, want, atol=3e-2, rtol=3e-2), "mismatch vs reference"

    print("KERNEL_OK")
</pallas_src>

<mosaic_0001>
module attributes {stable_mosaic.version = 11 : i64} {
  func.func @expert_gate_kernel(%arg0: i32, %arg1: memref<8x32xf32, #tpu.memory_space<vmem>>, %arg2: memref<32x264xbf16, #tpu.memory_space<vmem>>, %arg3: memref<1x264xf32, #tpu.memory_space<vmem>>, %arg4: memref<256x128xbf16, #tpu.memory_space<vmem>>, %arg5: memref<1x128xf32, #tpu.memory_space<vmem>>, %arg6: memref<128x64xbf16, #tpu.memory_space<vmem>>, %arg7: memref<1x64xf32, #tpu.memory_space<vmem>>, %arg8: memref<8x128xf32, #tpu.memory_space<vmem>>) attributes {dimension_semantics = [#tpu.dimension_semantics<parallel>], iteration_bounds = array<i64: 1>, scalar_prefetch = 0 : i64, scratch_operands = 0 : i64, tpu.core_type = #tpu.core_type<tc>, window_params = [{transform_indices = @transform_0, window_bounds = array<i64: 8, 32>}, {pipeline_mode = #tpu.pipeline_mode<synchronous>, transform_indices = @transform_1, window_bounds = array<i64: 32, 264>}, {pipeline_mode = #tpu.pipeline_mode<synchronous>, transform_indices = @transform_2, window_bounds = array<i64: 1, 264>}, {pipeline_mode = #tpu.pipeline_mode<synchronous>, transform_indices = @transform_3, window_bounds = array<i64: 256, 128>}, {pipeline_mode = #tpu.pipeline_mode<synchronous>, transform_indices = @transform_4, window_bounds = array<i64: 1, 128>}, {pipeline_mode = #tpu.pipeline_mode<synchronous>, transform_indices = @transform_5, window_bounds = array<i64: 128, 64>}, {pipeline_mode = #tpu.pipeline_mode<synchronous>, transform_indices = @transform_6, window_bounds = array<i64: 1, 64>}, {transform_indices = @transform_7, window_bounds = array<i64: 8, 128>}]} {
    %c0 = arith.constant 0 : index
    %c0_0 = arith.constant 0 : index
    %0 = vector.load %arg1[%c0, %c0_0] : memref<8x32xf32, #tpu.memory_space<vmem>>, vector<8x32xf32>
    %1 = arith.truncf %0 : vector<8x32xf32> to vector<8x32xbf16>
    %c0_1 = arith.constant 0 : index
    %c0_2 = arith.constant 0 : index
    %2 = vector.load %arg2[%c0_1, %c0_2] : memref<32x264xbf16, #tpu.memory_space<vmem>>, vector<32x264xbf16>
    %cst = arith.constant dense<0.000000e+00> : vector<8x264xf32>
    %3 = tpu.matmul %1, %2, %cst {dimension_numbers = #tpu.dot_dimension_numbers<[1], [0], [0], [1], [0, 0, 1, 1], [], []>} : vector<8x32xbf16>, vector<32x264xbf16>, vector<8x264xf32> -> vector<8x264xf32>
    %c0_3 = arith.constant 0 : index
    %c0_4 = arith.constant 0 : index
    %4 = vector.load %arg3[%c0_3, %c0_4] : memref<1x264xf32, #tpu.memory_space<vmem>>, vector<1x264xf32>
    %5 = vector.broadcast %4 : vector<1x264xf32> to vector<8x264xf32>
    %6 = arith.addf %3, %5 : vector<8x264xf32>
    %7 = vector.extract_strided_slice %6 {offsets = [0, 0], sizes = [8, 256], strides = [1, 1]} : vector<8x264xf32> to vector<8x256xf32>
    %cst_5 = arith.constant 0.000000e+00 : f32
    %8 = vector.broadcast %cst_5 : f32 to vector<8x256xf32>
    %9 = arith.maximumf %7, %8 : vector<8x256xf32>
    %10 = vector.extract_strided_slice %6 {offsets = [0, 256], sizes = [8, 8], strides = [1, 1]} : vector<8x264xf32> to vector<8x8xf32>
    %11 = arith.truncf %9 : vector<8x256xf32> to vector<8x256xbf16>
    %c0_6 = arith.constant 0 : index
    %c0_7 = arith.constant 0 : index
    %12 = vector.load %arg4[%c0_6, %c0_7] : memref<256x128xbf16, #tpu.memory_space<vmem>>, vector<256x128xbf16>
    %cst_8 = arith.constant dense<0.000000e+00> : vector<8x128xf32>
    %13 = tpu.matmul %11, %12, %cst_8 {dimension_numbers = #tpu.dot_dimension_numbers<[1], [0], [0], [1], [0, 0, 1, 1], [], []>} : vector<8x256xbf16>, vector<256x128xbf16>, vector<8x128xf32> -> vector<8x128xf32>
    %c0_9 = arith.constant 0 : index
    %c0_10 = arith.constant 0 : index
    %14 = vector.load %arg5[%c0_9, %c0_10] : memref<1x128xf32, #tpu.memory_space<vmem>>, vector<1x128xf32>
    %15 = vector.broadcast %14 : vector<1x128xf32> to vector<8x128xf32>
    %16 = arith.addf %13, %15 : vector<8x128xf32>
    %cst_11 = arith.constant 0.000000e+00 : f32
    %17 = vector.broadcast %cst_11 : f32 to vector<8x128xf32>
    %18 = arith.maximumf %16, %17 : vector<8x128xf32>
    %19 = arith.truncf %18 : vector<8x128xf32> to vector<8x128xbf16>
    %c0_12 = arith.constant 0 : index
    %c0_13 = arith.constant 0 : index
    %20 = vector.load %arg6[%c0_12, %c0_13] : memref<128x64xbf16, #tpu.memory_space<vmem>>, vector<128x64xbf16>
    %cst_14 = arith.constant dense<0.000000e+00> : vector<8x64xf32>
    %21 = tpu.matmul %19, %20, %cst_14 {dimension_numbers = #tpu.dot_dimension_numbers<[1], [0], [0], [1], [0, 0, 1, 1], [], []>} : vector<8x128xbf16>, vector<128x64xbf16>, vector<8x64xf32> -> vector<8x64xf32>
    %c0_15 = arith.constant 0 : index
    %c0_16 = arith.constant 0 : index
    %22 = vector.load %arg7[%c0_15, %c0_16] : memref<1x64xf32, #tpu.memory_space<vmem>>, vector<1x64xf32>
    %23 = vector.broadcast %22 : vector<1x64xf32> to vector<8x64xf32>
    %24 = arith.addf %21, %23 : vector<8x64xf32>
    %cst_17 = arith.constant 0.000000e+00 : f32
    %25 = vector.broadcast %cst_17 : f32 to vector<8x64xf32>
    %26 = arith.maximumf %24, %25 : vector<8x64xf32>
    %27 = vector.extract_strided_slice %10 {offsets = [0, 0], sizes = [8, 4], strides = [1, 1]} : vector<8x8xf32> to vector<8x4xf32>
    %cst_18 = arith.constant dense<0xFF800000> : vector<8xf32>
    %28 = vector.multi_reduction <maximumf>, %27, %cst_18 [1] : vector<8x4xf32> to vector<8xf32>
    %29 = vector.shape_cast %28 : vector<8xf32> to vector<8x1xf32>
    %30 = vector.broadcast %29 : vector<8x1xf32> to vector<8x4xf32>
    %31 = arith.subf %27, %30 : vector<8x4xf32>
    %32 = math.exp %31 : vector<8x4xf32>
    %cst_19 = arith.constant dense<0.000000e+00> : vector<8xf32>
    %33 = vector.multi_reduction <add>, %32, %cst_19 [1] : vector<8x4xf32> to vector<8xf32>
    %34 = vector.shape_cast %33 : vector<8xf32> to vector<8x1xf32>
    %35 = tpu.reciprocal %34 {approx = true} : vector<8x1xf32> -> vector<8x1xf32>
    %36 = vector.broadcast %35 : vector<8x1xf32> to vector<8x4xf32>
    %37 = arith.mulf %32, %36 : vector<8x4xf32>
    %38 = vector.extract_strided_slice %37 {offsets = [0, 0], sizes = [8, 1], strides = [1, 1]} : vector<8x4xf32> to vector<8x1xf32>
    %39 = vector.extract_strided_slice %26 {offsets = [0, 0], sizes = [8, 16], strides = [1, 1]} : vector<8x64xf32> to vector<8x16xf32>
    %40 = vector.broadcast %38 : vector<8x1xf32> to vector<8x16xf32>
    %41 = arith.mulf %40, %39 : vector<8x16xf32>
    %42 = vector.extract_strided_slice %37 {offsets = [0, 1], sizes = [8, 1], strides = [1, 1]} : vector<8x4xf32> to vector<8x1xf32>
    %43 = vector.extract_strided_slice %26 {offsets = [0, 16], sizes = [8, 16], strides = [1, 1]} : vector<8x64xf32> to vector<8x16xf32>
    %44 = vector.broadcast %42 : vector<8x1xf32> to vector<8x16xf32>
    %45 = arith.mulf %44, %43 : vector<8x16xf32>
    %46 = arith.addf %41, %45 : vector<8x16xf32>
    %47 = vector.extract_strided_slice %37 {offsets = [0, 2], sizes = [8, 1], strides = [1, 1]} : vector<8x4xf32> to vector<8x1xf32>
    %48 = vector.extract_strided_slice %26 {offsets = [0, 32], sizes = [8, 16], strides = [1, 1]} : vector<8x64xf32> to vector<8x16xf32>
    %49 = vector.broadcast %47 : vector<8x1xf32> to vector<8x16xf32>
    %50 = arith.mulf %49, %48 : vector<8x16xf32>
    %51 = arith.addf %46, %50 : vector<8x16xf32>
    %52 = vector.extract_strided_slice %37 {offsets = [0, 3], sizes = [8, 1], strides = [1, 1]} : vector<8x4xf32> to vector<8x1xf32>
    %53 = vector.extract_strided_slice %26 {offsets = [0, 48], sizes = [8, 16], strides = [1, 1]} : vector<8x64xf32> to vector<8x16xf32>
    %54 = vector.broadcast %52 : vector<8x1xf32> to vector<8x16xf32>
    %55 = arith.mulf %54, %53 : vector<8x16xf32>
    %56 = arith.addf %51, %55 : vector<8x16xf32>
    %57 = vector.extract_strided_slice %10 {offsets = [0, 4], sizes = [8, 4], strides = [1, 1]} : vector<8x8xf32> to vector<8x4xf32>
    %cst_20 = arith.constant dense<0xFF800000> : vector<8xf32>
    %58 = vector.multi_reduction <maximumf>, %57, %cst_20 [1] : vector<8x4xf32> to vector<8xf32>
    %59 = vector.shape_cast %58 : vector<8xf32> to vector<8x1xf32>
    %60 = vector.broadcast %59 : vector<8x1xf32> to vector<8x4xf32>
    %61 = arith.subf %57, %60 : vector<8x4xf32>
    %62 = math.exp %61 : vector<8x4xf32>
    %cst_21 = arith.constant dense<0.000000e+00> : vector<8xf32>
    %63 = vector.multi_reduction <add>, %62, %cst_21 [1] : vector<8x4xf32> to vector<8xf32>
    %64 = vector.shape_cast %63 : vector<8xf32> to vector<8x1xf32>
    %65 = tpu.reciprocal %64 {approx = true} : vector<8x1xf32> -> vector<8x1xf32>
    %66 = vector.broadcast %65 : vector<8x1xf32> to vector<8x4xf32>
    %67 = arith.mulf %62, %66 : vector<8x4xf32>
    %68 = vector.extract_strided_slice %67 {offsets = [0, 0], sizes = [8, 1], strides = [1, 1]} : vector<8x4xf32> to vector<8x1xf32>
    %69 = vector.extract_strided_slice %26 {offsets = [0, 0], sizes = [8, 16], strides = [1, 1]} : vector<8x64xf32> to vector<8x16xf32>
    %70 = vector.broadcast %68 : vector<8x1xf32> to vector<8x16xf32>
    %71 = arith.mulf %70, %69 : vector<8x16xf32>
    %72 = vector.extract_strided_slice %67 {offsets = [0, 1], sizes = [8, 1], strides = [1, 1]} : vector<8x4xf32> to vector<8x1xf32>
    %73 = vector.extract_strided_slice %26 {offsets = [0, 16], sizes = [8, 16], strides = [1, 1]} : vector<8x64xf32> to vector<8x16xf32>
    %74 = vector.broadcast %72 : vector<8x1xf32> to vector<8x16xf32>
    %75 = arith.mulf %74, %73 : vector<8x16xf32>
    %76 = arith.addf %71, %75 : vector<8x16xf32>
    %77 = vector.extract_strided_slice %67 {offsets = [0, 2], sizes = [8, 1], strides = [1, 1]} : vector<8x4xf32> to vector<8x1xf32>
    %78 = vector.extract_strided_slice %26 {offsets = [0, 32], sizes = [8, 16], strides = [1, 1]} : vector<8x64xf32> to vector<8x16xf32>
    %79 = vector.broadcast %77 : vector<8x1xf32> to vector<8x16xf32>
    %80 = arith.mulf %79, %78 : vector<8x16xf32>
    %81 = arith.addf %76, %80 : vector<8x16xf32>
    %82 = vector.extract_strided_slice %67 {offsets = [0, 3], sizes = [8, 1], strides = [1, 1]} : vector<8x4xf32> to vector<8x1xf32>
    %83 = vector.extract_strided_slice %26 {offsets = [0, 48], sizes = [8, 16], strides = [1, 1]} : vector<8x64xf32> to vector<8x16xf32>
    %84 = vector.broadcast %82 : vector<8x1xf32> to vector<8x16xf32>
    %85 = arith.mulf %84, %83 : vector<8x16xf32>
    %86 = arith.addf %81, %85 : vector<8x16xf32>
    %87 = tpu.concatenate %56, %86 in 1 : vector<8x16xf32>, vector<8x16xf32> -> vector<8x32xf32>
    %cst_22 = arith.constant 0.000000e+00 : f32
    %88 = vector.broadcast %cst_22 : f32 to vector<8x96xf32>
    %89 = tpu.concatenate %87, %88 in 1 : vector<8x32xf32>, vector<8x96xf32> -> vector<8x128xf32>
    %c0_23 = arith.constant 0 : index
    %c0_24 = arith.constant 0 : index
    %90 = vector.load %arg8[%c0_23, %c0_24] : memref<8x128xf32, #tpu.memory_space<vmem>>, vector<8x128xf32>
    tpu.vector_store %arg8[%c0_23, %c0_24], %89 {strides = array<i32>} : memref<8x128xf32, #tpu.memory_space<vmem>>, vector<8x128xf32>,
    return
  }
  func.func @transform_0(%arg0: i32) -> (i32, i32) {
    %c0_i32 = arith.constant 0 : i32
    %c0_i32_0 = arith.constant 0 : i32
    return %arg0, %c0_i32 : i32, i32
  }
  func.func @transform_1(%arg0: i32) -> (i32, i32) {
    %c0_i32 = arith.constant 0 : i32
    %c0_i32_0 = arith.constant 0 : i32
    %c0_i32_1 = arith.constant 0 : i32
    return %c0_i32, %c0_i32_0 : i32, i32
  }
  func.func @transform_2(%arg0: i32) -> (i32, i32) {
    %c0_i32 = arith.constant 0 : i32
    %c0_i32_0 = arith.constant 0 : i32
    %c0_i32_1 = arith.constant 0 : i32
    return %c0_i32, %c0_i32_0 : i32, i32
  }
  func.func @transform_3(%arg0: i32) -> (i32, i32) {
    %c0_i32 = arith.constant 0 : i32
    %c0_i32_0 = arith.constant 0 : i32
    %c0_i32_1 = arith.constant 0 : i32
    return %c0_i32, %c0_i32_0 : i32, i32
  }
  func.func @transform_4(%arg0: i32) -> (i32, i32) {
    %c0_i32 = arith.constant 0 : i32
    %c0_i32_0 = arith.constant 0 : i32
    %c0_i32_1 = arith.constant 0 : i32
    return %c0_i32, %c0_i32_0 : i32, i32
  }
  func.func @transform_5(%arg0: i32) -> (i32, i32) {
    %c0_i32 = arith.constant 0 : i32
    %c0_i32_0 = arith.constant 0 : i32
    %c0_i32_1 = arith.constant 0 : i32
    return %c0_i32, %c0_i32_0 : i32, i32
  }
  func.func @transform_6(%arg0: i32) -> (i32, i32) {
    %c0_i32 = arith.constant 0 : i32
    %c0_i32_0 = arith.constant 0 : i32
    %c0_i32_1 = arith.constant 0 : i32
    return %c0_i32, %c0_i32_0 : i32, i32
  }
  func.func @transform_7(%arg0: i32) -> (i32, i32) {
    %c0_i32 = arith.constant 0 : i32
    %c0_i32_0 = arith.constant 0 : i32
    return %arg0, %c0_i32 : i32, i32
  }
}

</mosaic_0001>

<bundles_post_ra>
// kernel: tpu_custom_call.1
= control target key start
LH: loop header
LB: loop body
LE: loop exit
PB: predicated region body
PF: predicated region fallthrough
CT: control target
= control target key end

     0   :  { %12 = vsyncpa [#allocation3], 0  ;;  %s957_s0 = inlined_call_operand.vmem [shape: f32[8,32], index: 0, kind: input, shape index: {}]   ;;  %s958_s1 = inlined_call_operand.vmem [shape: bf16[32,264], index: 1, kind: input, shape index: {}]   ;;  %s959_s2 = inlined_call_operand.vmem [shape: f32[1,264], index: 2, kind: input, shape index: {}]   ;;  %s960_s3 = inlined_call_operand.hbm [shape: bf16[256,128], index: 3, kind: input, shape index: {}]   ;;  %s961_s4 = inlined_call_operand.vmem [shape: f32[1,128], index: 4, kind: input, shape index: {}]   ;;  %s962_s5 = inlined_call_operand.vmem [shape: bf16[128,64], index: 5, kind: input, shape index: {}]   ;;  %s963_s6 = inlined_call_operand.vmem [shape: f32[1,64], index: 6, kind: input, shape index: {}]   ;;  %s964_s7 = inlined_call_operand.hbm [shape: f32[8,128], index: 7, kind: output, shape index: {}]  }
   0x1   :  { %13 = vsyncpa [#allocation4], 0  ;;  %s810_s24 = smov [#allocation2]  }
   0x2   :  { %s25_s25 = sshll.u32 %s810_s24, 4  ;;  %s26_s25 = int_to_ptr.vmem [resolvable:$true] %s25_s25 }
   0x3   :  { %s774_s26 = scalar_lea.vmem %s26_s25, 2048  ;;  %p779_p1 = scmp.lt.s32.totalorder %s26_s25, %s26_s25 }
   0x4   :  { %p775_p0 = scmp.ne.s32.totalorder %s26_s25, %s774_s26  ;;  %p780_p2 = scmp.lt.s32.totalorder %s774_s26, %s774_s26 }
   0x6   :  { %p781_p3 = por %p780_p2, %p779_p1 }
   0x8   :  { %p782_p4 = pnand %p781_p3, %p775_p0 }
   0xa   :  { %785 = shalt.err (!%p782_p4)
}
   0xb   :  { %s811_s27 = smov 64   ;;  %s812_s28 = smov 4  }
   0xc   :  { %31 = dma.hbm_to_vmem [thread:$0]  %s960_s3, 2048, %s26_s25, [#allocation3], %s811_s27, %s811_s27, %s812_s28  }
   0xd   :  { %806 = dma.done.wait [#allocation3], 2048  }
   0xe   :  { %807 = vsyncadd [#allocation3], 4294965248  ;;  %v813_v0 = vmov 0.0   ;;  %vm814_vm0 = vmmov 0   ;;  %v815_v1 = vmov 0   ;;  %v42_v4 = vld [vmem:[%s957_s0] sm:$0xff]  ;;  %v54_v25 = vlaneseq }
   0xf   :  { %670 = vmatprep.subr.bf16.mxu1 %v813_v0  ;;  %674 = vmatprep.mubr.msk.bf16.mxu1 %vm814_vm0, %v813_v0  ;;  %v726_v2 = vld [vmem:[%s958_s1 + $0x20] ss:$12 sps:$4 sm:$0xff]   ;;  %v727_v3 = vld [vmem:[%s958_s1 + $0x8] ss:$12 sps:$4 sm:$0xff]   ;;  %v730_v6 = vld [vmem:[%s958_s1 + $0x18] ss:$12 sps:$4 sm:$0xff]   ;;  %v43_v8 = vpack.c.bf16 %v42_v4, %v42_v4 }
  0x10   :  { %137 = vmatprep.mubr.bf16.mxu0 %v815_v1  ;;  %671 = vmatpush3.bf16.msra.mxu1 %v726_v2  ;;  %v728_v5 = vld [vmem:[%s958_s1 + $0x1c] ss:$12 sps:$4 sm:$0xff]   ;;  %vm101_vm1 = vcmask 261120   ;;  %v731_v7 = vld [vmem:[%s958_s1 + $0x4] ss:$12 sps:$4 sm:$0xff]   ;;  %v55_v26 = vshrl.u32 %v54_v25, 7 }
  0x11   :  { %672 = vmatprep.subr.bf16.mxu1 %v813_v0  ;;  %117 = vmatprep.subr.bf16.mxu0 %v728_v5  ;;  %v733_v9 = vld [vmem:[%s958_s1] ss:$12 sps:$4 sm:$0xff]   ;;  %v734_v10 = vld [vmem:[#allocation2 + $0x78] sm:$0xff]   ;;  %v736_v12 = vld [vmem:[#allocation2 + $0x70] sm:$0xff]   ;;  %vm527_vm2 = vcmask 64544   ;;  %vm479_vm3 = vcmask 31744  }
  0x12   :  { %118 = vmatpush1.bf16.msra.mxu0 %v730_v6  ;;  %v735_v11 = vld [vmem:[#allocation2 + $0x38] sm:$0xff]   ;;  %v737_v13 = vld [vmem:[#allocation2 + $0x30] sm:$0xff]   ;;  %v738_v14 = vld [vmem:[#allocation2 + $0x68] sm:$0xff]   ;;  %v64_v27 = vsub.s32 2, %v55_v26  ;;  %v56_v30 = vsub.s32 0, %v55_v26  ;;  %v60_v31 = vsub.s32 1, %v55_v26 }
  0x13   :  { %119 = vmatprep.subr.bf16.mxu0 %v731_v7  ;;  %v739_v15 = vld [vmem:[#allocation2 + $0x28] sm:$0xff]   ;;  %v740_v16 = vld [vmem:[#allocation2 + $0x60] sm:$0xff]   ;;  %v742_v18 = vld [vmem:[#allocation2 + $0x58] sm:$0xff]   ;;  %s816_s26 = smov 124   ;;  %s824_s15 = smov 96   ;;  %vm583_vm4 = vcmask 130048  }
  0x14   :  { %673 = vmatpush3.bf16.msra.mxu1 %v727_v3  ;;  %v741_v17 = vld [vmem:[#allocation2 + $0x20] sm:$0xff]   ;;  %v743_v19 = vld [vmem:[#allocation2 + $0x18] sm:$0xff]   ;;  %v744_v20 = vld [vmem:[#allocation2 + $0x50] sm:$0xff]   ;;  %s825_s16 = smov 112   ;;  %s826_s17 = smov 80  }
  0x15   :  { %678 = vmatprep.subr.bf16.mxu1 %v813_v0  ;;  %v745_v21 = vld [vmem:[#allocation2 + $0x10] sm:$0xff]   ;;  %v746_v22 = vld [vmem:[#allocation2 + $0x48] sm:$0xff]   ;;  %v748_v24 = vld [vmem:[#allocation2 + $0x40] sm:$0xff]   ;;  %s828_s18 = smov [#allocation5]  }
  0x16   :  { %120 = vmatpush1.bf16.msra.mxu0 %v733_v9  ;;  %v747_v23 = vld [vmem:[#allocation2 + $0x8] sm:$0xff]   ;;  %v52_v28 = vld [vmem:[%s959_s2] sm:$0x7]  ;;  %v750_v55 = vld [vmem:[%s962_s5 + $0x38] sm:$0xff]   ;;  %s593_s19 = sshll.u32 %s828_s18, 4  ;;  %s594_s19 = int_to_ptr.vmem [resolvable:$true] %s593_s19 }
  0x17   :  { %675 = vmatmul.mubr.msk.bf16.vlgmr.msra.gmra.mxu1 %vm101_vm1, %v43_v8  ;;  %639 = vmatprep.subr.bf16.mxu0 %v734_v10  ;;  %v65_v29 = vrot.slane %v52_v28, %v64_v27  ;;  %v57_v34 = vrot.slane %v52_v28, %v56_v30  ;;  %v61_v38 = vrot.slane %v52_v28, %v60_v31  ;;  %v749_v50 = vld [vmem:[#allocation2] sm:$0xff]   ;;  %v751_v56 = vld [vmem:[%s962_s5 + $0x30] sm:$0xff]   ;;  %v752_v57 = vld [vmem:[%s962_s5 + $0x28] sm:$0xff]   ;;  %v819_v27 = vmov 4   ;;  %s786_s20 = scalar_lea.vmem %s594_s19, 128  ;;  %p791_p6 = scmp.lt.s32.totalorder %s594_s19, %s594_s19 }
  0x18   :  { %694 = vmatprep.mubr.msk.bf16.mxu1 %vm814_vm0, %v813_v0  ;;  %679 = vmatpush3.bf16.msra.mxu1 %v750_v55  ;;  %v753_v59 = vld [vmem:[%s962_s5 + $0x20] sm:$0xff]   ;;  %v754_v60 = vld [vmem:[%s962_s5 + $0x18] sm:$0xff]   ;;  %v755_v61 = vld [vmem:[%s962_s5 + $0x10] sm:$0xff]   ;;  %v820_v28 = vmov 7   ;;  %v821_v31 = vmov 1   ;;  %p787_p5 = scmp.ne.s32.totalorder %s594_s19, %s786_s20  ;;  %p792_p7 = scmp.lt.s32.totalorder %s786_s20, %s786_s20 }
  0x19   :  { %608 = vmatmul.mubr.msk.bf16.vlgmr.msra.gmra.mxu0 %vm101_vm1, %v43_v8  ;;  %680 = vmatprep.subr.bf16.mxu1 %v813_v0  ;;  %v756_v62 = vld [vmem:[%s962_s5 + $0x8] sm:$0xff]   ;;  %v757_v63 = vld [vmem:[%s962_s5] sm:$0xff]  }
  0x1a   :  { %640 = vmatpush3.bf16.msra.mxu0 %v735_v11  ;;  %v610_v3 = vld [vmem:[%s961_s4] ss:$0 sm:$0xff]  ;;  %p793_p8 = por %p792_p7, %p791_p6 }
  0x1b   :  { %641 = vmatprep.subr.bf16.mxu0 %v736_v12 }
  0x1c   :  { %681 = vmatpush3.bf16.msra.mxu1 %v751_v56  ;;  %p794_p9 = pnand %p793_p8, %p787_p5 }
  0x1d   :  { %682 = vmatprep.subr.bf16.mxu1 %v813_v0 }
  0x1e   :  { %642 = vmatpush3.bf16.msra.mxu0 %v737_v13 }
  0x1f   :  { %643 = vmatprep.subr.bf16.mxu0 %v738_v14 }
  0x20   :  { %683 = vmatpush3.bf16.msra.mxu1 %v752_v57 }
  0x21   :  { %684 = vmatprep.subr.bf16.mxu1 %v813_v0 }
  0x22   :  { %644 = vmatpush3.bf16.msra.mxu0 %v739_v15 }
  0x23   :  { %645 = vmatprep.subr.bf16.mxu0 %v740_v16 }
  0x24   :  { %685 = vmatpush3.bf16.msra.mxu1 %v753_v59 }
  0x25   :  { %686 = vmatprep.subr.bf16.mxu1 %v813_v0 }
  0x26   :  { %646 = vmatpush3.bf16.msra.mxu0 %v741_v17  ;;  %v817_v17 = vmov 6  }
  0x27   :  { %647 = vmatprep.subr.bf16.mxu0 %v742_v18  ;;  %718 = vset.pattern.permute.xlu0 %v817_v17  ;;  %v818_v18 = vmov 5  }
  0x28   :  { %687 = vmatpush3.bf16.msra.mxu1 %v754_v60  ;;  %717 = vset.pattern.permute.xlu1 %v818_v18 }
  0x29   :  { %688 = vmatprep.subr.bf16.mxu1 %v813_v0 }
  0x2a   :  { %648 = vmatpush3.bf16.msra.mxu0 %v743_v19 }
  0x2b   :  { %649 = vmatprep.subr.bf16.mxu0 %v744_v20 }
  0x2c   :  { %689 = vmatpush3.bf16.msra.mxu1 %v755_v61 }
  0x2d   :  { %690 = vmatprep.subr.bf16.mxu1 %v813_v0 }
  0x2e   :  { %650 = vmatpush3.bf16.msra.mxu0 %v745_v21 }
  0x2f   :  { %651 = vmatprep.subr.bf16.mxu0 %v746_v22 }
  0x30   :  { %691 = vmatpush3.bf16.msra.mxu1 %v756_v62 }
  0x31   :  { %692 = vmatprep.subr.bf16.mxu1 %v813_v0 }
  0x32   :  { %652 = vmatpush3.bf16.msra.mxu0 %v747_v23 }
  0x33   :  { %653 = vmatprep.subr.bf16.mxu0 %v748_v24 }
  0x34   :  { %693 = vmatpush3.bf16.msra.mxu1 %v757_v63 }
  0x36   :  { %654 = vmatpush3.bf16.msra.mxu0 %v749_v50 }
  0xd7   :  { %v180_v32 = vpop.f32.mrf.mxu1 }
  0xd8   :  { %v906_v33 = vadd.f32 %v180_v32, %v65_v29  ;;  %v822_v32 = vmov 2  }
  0xd9   :  { %v676_v35 = vpop.f32.mrf.mxu1  ;;  %v139_v40 = vpop.f32.mrf.mxu0 }
  0xda   :  { %v528_v36 = vsel %vm527_vm2, %v906_v33, -inf  ;;  %v480_v37 = vsel %vm479_vm3, %v906_v33, -inf  ;;  %v140_v41 = vadd.f32 %v139_v40, %v57_v34  ;;  %v627_v34 = vld [vmem:[%s963_s6] ss:$0 sm:$0xff]  ;;  %s827_s6 = smov 16  }
  0xdb   :  { %529 = vmax.xlane.f32.xlu0 %v528_v36  ;;  %481 = vmax.xlane.f32.xlu1 %v480_v37  ;;  %v183_v39 = vpop.f32.mrf.mxu1  ;;  %v141_v43 = vpop.f32.mrf.mxu0 }
  0xdc   :  { %v142_v44 = vadd.f32 %v141_v43, %v61_v38  ;;  %v186_v46 = vmax.f32 %v140_v41, 0.0 }
  0xdd   :  { %v677_v42 = vpop.f32.mrf.mxu1  ;;  %v143_v45 = vpop.f32.mrf.mxu0 }
  0xde   :  { %v187_v47 = vmax.f32 %v142_v44, 0.0  ;;  %v188_v51 = vpack.c.bf16 %v186_v46, %v186_v46 }
  0xdf   :  { %v144_v48 = vpop.f32.mrf.mxu0 }
  0xe0   :  { %v189_v49 = vpack.c.bf16 %v187_v47, %v187_v47 }
  0xe2   :  { %357 = vmatprep.mubr.bf16.mxu0 %v189_v49 }
  0xe3   :  { %358 = vmatmul.mubr.bf16.vlgmr.msra.gmra.mxu0 %v188_v51 }
 0x164   :  { %v530_v52 = vpop.xlane.xlu0 %529  ;;  %v482_v11 = vpop.xlane.xlu1 %481 }
 0x165   :  { %v531_v53 = vsub.f32 %v906_v33, %v530_v52  ;;  %v483_v12 = vsub.f32 %v906_v33, %v482_v11  ;;  %v823_v33 = vmov 3  }
 0x167   :  { %v532_v54 = vmul.f32 1.442695, %v531_v53  ;;  %v484_v13 = vmul.f32 1.442695, %v483_v12 }
 0x169   :  { %758 = vpow2.f32 %v532_v54 }
 0x16a   :  { %760 = vpow2.f32 %v484_v13 }
 0x176   :  { %v759_v58 = vpop.eup %758 }
 0x177   :  { %535 = vrot.lane.b32.xlu0 %v759_v58, %s816_s26  ;;  %v761_v15 = vpop.eup %760 }
 0x178   :  { %v486_v16 = vsel %vm479_vm3, %v761_v15, 0.0 }
 0x1a3   :  { %v655_v2 = vpop.f32.mrf.mxu0 }
 0x1a5   :  { %v656_v4 = vpop.f32.mrf.mxu0 }
 0x1a6   :  { %v657_v5 = vadd.f32 %v656_v4, %v655_v2 }
 0x1a7   :  { %v658_v6 = vpop.f32.mrf.mxu0 }
 0x1a8   :  { %v360_v7 = vadd.f32 %v657_v5, %v610_v3 }
 0x1a9   :  { %v659_v8 = vpop.f32.mrf.mxu0 }
 0x1aa   :  { %v365_v9 = vmax.f32 %v360_v7, 0.0 }
 0x1ac   :  { %v366_v10 = vpack.c.bf16 %v365_v9, %v365_v9 }
 0x1ae   :  { %695 = vmatmul.mubr.bf16.vlgmr.msra.gmra.mxu1 %v366_v10 }
 0x1e9   :  { %v536_v0 = vpop.permute.xlu0 %535 }
 0x1ea   :  { %v538_v14 = vsel %vm479_vm3, %v536_v0, 0.0 }
 0x1eb   :  { %539 = vadd.xlane.f32.xlu1 %v538_v14 }
 0x1ef   :  { %487 = vadd.xlane.f32.xlu1 %v486_v16 }
 0x26e   :  { %v472_v19 = vpop.f32.mrf.mxu1 }
 0x26f   :  { %v473_v35 = vadd.f32 %v627_v34, %v472_v19 }
 0x270   :  { %v696_v21 = vpop.f32.mrf.mxu1 }
 0x271   :  { %v478_v36 = vmax.f32 %v473_v35, 0.0 }
 0x272   :  { %v475_v22 = vpop.f32.mrf.mxu1 }
 0x274   :  { %v540_v20 = vpop.xlane.xlu1 %539  ;;  %v697_v23 = vpop.f32.mrf.mxu1 }
 0x275   :  { %762 = vrcp.f32 %v540_v20 }
 0x278   :  { %v488_v24 = vpop.xlane.xlu1 %487 }
 0x279   :  { %764 = vrcp.f32 %v488_v24 }
 0x282   :  { %v763_v25 = vpop.eup %762 }
 0x283   :  { %v542_v26 = vmul.f32 %v763_v25, %v759_v58 }
 0x285   :  { %560 = vperm.xlu0 %718, %v542_v26   ;;  %550 = vperm.xlu1 %717, %v542_v26  }
 0x286   :  { %v765_v29 = vpop.eup %764 }
 0x287   :  { %v490_v30 = vmul.f32 %v765_v29, %v761_v15 }
 0x289   :  { %723 = vset.pattern.permute.xlu0 %v819_v27  ;;  %719 = vset.pattern.permute.xlu1 %v820_v28 }
 0x28a   :  { %545 = vperm.xlu0 %723, %v542_v26   ;;  %570 = vperm.xlu1 %719, %v542_v26  }
 0x28e   :  { %720 = vset.pattern.permute.xlu1 %v821_v31  ;;  %725 = vset.pattern.permute.xlu0 %v820_v28 }
 0x28f   :  { %498 = vperm.xlu1 %720, %v490_v30  }
 0x293   :  { %721 = vset.pattern.permute.xlu1 %v822_v32 }
 0x294   :  { %508 = vperm.xlu1 %721, %v490_v30  }
 0x298   :  { %722 = vset.pattern.permute.xlu1 %v823_v33 }
 0x299   :  { %518 = vperm.xlu1 %722, %v490_v30  }
 0x29d   :  { %724 = vset.pattern.permute.xlu1 %v815_v1 }
 0x300   :  { %v561_v37 = vpop.permute.xlu0 %560  ;;  %v551_v38 = vpop.permute.xlu1 %550 }
 0x301   :  { %v563_v39 = vmul.f32 %v561_v37, %v478_v36  ;;  %v553_v40 = vmul.f32 %v551_v38, %v478_v36 }
 0x303   :  { %565 = vrot.lane.b32.xlu1 %v563_v39, %s824_s15  ;;  %555 = vrot.lane.b32.xlu0 %v553_v40, %s825_s16 }
 0x305   :  { %v571_v41 = vpop.permute.xlu1 %570  ;;  %v546_v48 = vpop.permute.xlu0 %545 }
 0x306   :  { %v573_v42 = vmul.f32 %v571_v41, %v478_v36  ;;  %v548_v49 = vmul.f32 %v546_v48, %v478_v36 }
 0x307   :  { %493 = vperm.xlu1 %724, %v490_v30  }
 0x308   :  { %575 = vrot.lane.b32.xlu0 %v573_v42, %s826_s17 }
 0x30a   :  { %v499_v1 = vpop.permute.xlu1 %498 }
 0x30b   :  { %v501_v43 = vmul.f32 %v499_v1, %v478_v36 }
 0x30d   :  { %503 = vrot.lane.b32.xlu0 %v501_v43, %s825_s16 }
 0x30f   :  { %v509_v44 = vpop.permute.xlu1 %508 }
 0x310   :  { %v511_v45 = vmul.f32 %v509_v44, %v478_v36 }
 0x312   :  { %513 = vrot.lane.b32.xlu1 %v511_v45, %s824_s15 }
 0x314   :  { %v519_v46 = vpop.permute.xlu1 %518 }
 0x315   :  { %v521_v47 = vmul.f32 %v519_v46, %v478_v36 }
 0x317   :  { %523 = vrot.lane.b32.xlu0 %v521_v47, %s826_s17 }
 0x375   :  { %v556_v50 = vpop.permute.xlu0 %555  ;;  %v566_v52 = vpop.permute.xlu1 %565 }
 0x376   :  { %v558_v51 = vadd.f32 %v556_v50, %v548_v49 }
 0x378   :  { %v568_v53 = vadd.f32 %v566_v52, %v558_v51 }
 0x37a   :  { %v576_v54 = vpop.permute.xlu0 %575 }
 0x37b   :  { %v578_v55 = vadd.f32 %v576_v54, %v568_v53 }
 0x37d   :  { %580 = vrot.lane.b32.xlu1 %v578_v55, %s827_s6 }
 0x37f   :  { %v504_v58 = vpop.permute.xlu0 %503 }
 0x382   :  { %v494_v56 = vpop.permute.xlu1 %493 }
 0x383   :  { %v496_v57 = vmul.f32 %v494_v56, %v478_v36 }
 0x385   :  { %v506_v59 = vadd.f32 %v504_v58, %v496_v57 }
 0x386   :  { %v514_v60 = vpop.permute.xlu1 %513 }
 0x387   :  { %v516_v61 = vadd.f32 %v514_v60, %v506_v59 }
 0x389   :  { %v524_v62 = vpop.permute.xlu0 %523 }
 0x38a   :  { %v526_v63 = vadd.f32 %v524_v62, %v516_v61 }
 0x3ef   :  { %v581_v2 = vpop.permute.xlu1 %580 }
 0x3f0   :  { %v584_v3 = vsel %vm583_vm4, %v526_v63, %v581_v2 }
 0x3f1   :  { %v585_v4 = vsel %vm101_vm1, %v584_v3, 0.0 }
 0x3f2   :  { %586 = vst [vmem:[#allocation5] sm:$0xff] %v585_v4 }
 0x3f3   :  { %797 = shalt.err (!%p794_p9)
}
 0x3f4   :  { %596 = dma.vmem_to_hbm [thread:$0]  %s594_s19, 128, %s964_s7, [#allocation4]  }
 0x3f5   :  { %808 = dma.done.wait [#allocation4], 128  }
 0x3f6   :  { %809 = vsyncadd [#allocation4], 4294967168 }
 0x3f7   :  { %600 = vsyncpa [#allocation3], 1 }
 0x3f8   :  { %601 = vsyncpa [#allocation4], 1 }

</bundles_post_ra>
